<compile_context>
chip_gen: v5e
topology: v5e:2x2
jax: 0.10.0
libtpu: 0.0.40
codegen_flags: <defaults>
</compile_context>

<pallas_src>
import functools

import jax
import jax.numpy as jnp
from jax.experimental import pallas as pl
from jax.experimental.pallas import tpu as pltpu

_LANE = 128
_TARGET_TILE_BYTES = 1 << 20  # aim for ~1 MiB x row-tile per grid step


def _round_up(x, m):
    return (x + m - 1) // m * m


def _cdiv(a, b):
    return -(-a // b)


def _act(x, activation):
    if activation == "silu":
        return x * jax.nn.sigmoid(x)
    if activation == "tanh":
        return jnp.tanh(x)
    if activation == "relu":
        return jnp.maximum(x, 0.0)
    raise ValueError(f"unsupported activation: {activation}")


def _vmem_capacity_bytes():
    try:
        info = pltpu.get_tpu_info()
        cap = int(getattr(info, "vmem_capacity_bytes", 0))
        if cap > 0:
            return cap
    except Exception:
        pass
    return 64 * 1024 * 1024  # conservative default (v7x per-core VMEM)


# --------------------------------------------------------------------------- kernel


def _mlp_kernel(x_ref, w1_ref, b1_ref, w2_ref, b2_ref, w3_ref, b3_ref, o_ref,
                *, activation, residual, last_act):
    x_bf16 = x_ref[...].astype(jnp.bfloat16)

    h = jnp.dot(x_bf16, w1_ref[...], preferred_element_type=jnp.float32) + b1_ref[...]
    h = _act(h, activation)
    h = jnp.dot(h.astype(jnp.bfloat16), w2_ref[...],
                preferred_element_type=jnp.float32) + b2_ref[...]
    h = _act(h, activation)
    y = jnp.dot(h.astype(jnp.bfloat16), w3_ref[...],
                preferred_element_type=jnp.float32) + b3_ref[...]
    if last_act:
        y = _act(y, activation)
    if residual:
        # Only materialize the f32 copy of x when it is actually needed.
        y = y + x_ref[...].astype(jnp.float32)

    o_ref[...] = y.astype(o_ref.dtype)


# --------------------------------------------------------------------------- wrapper


def prepare_params(params, weight_dtype=jnp.bfloat16):
    """Pad weights/biases to lane multiples and cast weights once (hoisted prep)."""
    d_in, d_hid = params["w1"].shape
    d_out = params["w3"].shape[1]
    d_in_p = _round_up(d_in, _LANE)
    d_hid_p = _round_up(d_hid, _LANE)
    d_out_p = _round_up(d_out, _LANE)

    def pad2(a, rows, cols):
        if a.shape == (rows, cols):
            return a
        return jnp.pad(a, ((0, rows - a.shape[0]), (0, cols - a.shape[1])))

    return dict(
        w1=pad2(params["w1"], d_in_p, d_hid_p).astype(weight_dtype),
        w2=pad2(params["w2"], d_hid_p, d_hid_p).astype(weight_dtype),
        w3=pad2(params["w3"], d_hid_p, d_out_p).astype(weight_dtype),
        b1=pad2(params["b1"].reshape(1, -1), 1, d_hid_p).astype(jnp.float32),
        b2=pad2(params["b2"].reshape(1, -1), 1, d_hid_p).astype(jnp.float32),
        b3=pad2(params["b3"].reshape(1, -1), 1, d_out_p).astype(jnp.float32),
        dims=(d_in, d_hid, d_out),
    )


def base_mlp_pallas(x, params, *, activation="silu", residual=True, last_act=False,
                    tile_m=None, single_buffer_weights=None):
    """x: [N, input_dim]. params: raw dict (w1,b1,...) or output of prepare_params."""
    if "dims" not in params:
        params = prepare_params(params)
    d_in, d_hid, d_out = params["dims"]
    if residual:
        assert d_out == d_in, "residual requires output_dim == input_dim"
    n, d_in_x = x.shape
    assert d_in_x == d_in

    d_in_p = params["w1"].shape[0]
    d_hid_p = params["w1"].shape[1]
    d_out_p = params["w3"].shape[1]

    itemsize = jnp.dtype(x.dtype).itemsize
    # Min sublane tile per activation dtype (f32: 8, bf16: 16, int8/fp8: 32).
    sub = {4: 8, 2: 16, 1: 32}.get(itemsize, 8)

    weight_bytes = (params["w1"].size + params["w2"].size + params["w3"].size) \
        * params["w1"].dtype.itemsize
    if single_buffer_weights is None:
        # Only worth it once the resident weights are non-trivial (v7x 64 MiB VMEM).
        single_buffer_weights = weight_bytes > (8 << 20)
    w_buf = 1 if single_buffer_weights else 2

    budget = int(0.75 * _vmem_capacity_bytes())

    def est_vmem(tm):
        act_io = tm * (d_in_p + d_out_p) * itemsize * 2       # x / out, double-buffered
        interm = tm * max(d_hid_p, d_out_p) * 4 * 3           # f32 intermediates headroom
        bias = (2 * d_hid_p + d_out_p) * 4 * w_buf
        return act_io + interm + weight_bytes * w_buf + bias

    if tile_m is None:
        # Bytes-based tile: ~1 MiB of x rows per grid step, clamped to [256, 2048].
        tile_m = max(256, min(2048, _TARGET_TILE_BYTES // max(1, d_in_p * itemsize)))
    tile_m = max(sub, _round_up(tile_m, sub))
    while tile_m > sub and est_vmem(tile_m) > budget:
        tile_m = max(sub, _round_up(tile_m // 2, sub))

    # Balanced row tiles: near-equal sizes instead of one full tile + a ragged tail.
    num_tiles = max(1, _cdiv(n, tile_m))
    tile_m_eff = _round_up(_cdiv(n, num_tiles), sub)
    n_p = tile_m_eff * num_tiles

    # Skip the activation pad when it is a no-op.
    if n_p == n and d_in_p == d_in:
        x_p = x
    else:
        x_p = jnp.pad(x, ((0, n_p - n), (0, d_in_p - d_in)))

    vmem_limit = int(min(budget, max(est_vmem(tile_m_eff) + (4 << 20), 32 << 20)))

    kernel = functools.partial(_mlp_kernel, activation=activation,
                               residual=residual, last_act=last_act)

    full = lambda i: (0, 0)  # weights / biases: same full block every grid step
    wkw = dict(pipeline_mode=pl.Buffered(1)) if single_buffer_weights else {}

    out_p = pl.pallas_call(
        kernel,
        out_shape=jax.ShapeDtypeStruct((n_p, d_out_p), x.dtype),
        grid_spec=pltpu.PrefetchScalarGridSpec(
            num_scalar_prefetch=0,
            grid=(num_tiles,),
            in_specs=[
                pl.BlockSpec((tile_m_eff, d_in_p), lambda i: (i, 0)),  # x row-tile
                pl.BlockSpec((d_in_p, d_hid_p), full, **wkw),          # w1
                pl.BlockSpec((1, d_hid_p), full, **wkw),               # b1
                pl.BlockSpec((d_hid_p, d_hid_p), full, **wkw),         # w2
                pl.BlockSpec((1, d_hid_p), full, **wkw),               # b2
                pl.BlockSpec((d_hid_p, d_out_p), full, **wkw),         # w3
                pl.BlockSpec((1, d_out_p), full, **wkw),               # b3
            ],
            out_specs=pl.BlockSpec((tile_m_eff, d_out_p), lambda i: (i, 0)),
        ),
        compiler_params=pltpu.CompilerParams(
            dimension_semantics=("parallel",),
            vmem_limit_bytes=vmem_limit,
        ),
    )(x_p, params["w1"], params["b1"], params["w2"], params["b2"],
      params["w3"], params["b3"])

    # Skip the output slice when it is a no-op.
    if n_p == n and d_out_p == d_out:
        return out_p
    return out_p[:n, :d_out]


# --------------------------------------------------------------------------- references


def init_params(key, input_dim, hidden_dim, output_dim, dtype=jnp.float32):
    """Deterministic PyTorch-style (uniform +-1/sqrt(fan_in)) init."""
    ks = jax.random.split(key, 6)

    def lin(kw, kb, fan_in, fan_out):
        bound = 1.0 / jnp.sqrt(fan_in)
        w = jax.random.uniform(kw, (fan_in, fan_out), dtype, -bound, bound)
        b = jax.random.uniform(kb, (fan_out,), dtype, -bound, bound)
        return w, b

    w1, b1 = lin(ks[0], ks[1], input_dim, hidden_dim)
    w2, b2 = lin(ks[2], ks[3], hidden_dim, hidden_dim)
    w3, b3 = lin(ks[4], ks[5], hidden_dim, output_dim)
    return dict(w1=w1, b1=b1, w2=w2, b2=b2, w3=w3, b3=b3)


def base_mlp_ref(x, params, *, activation="silu", residual=True, last_act=False):
    """Full-f32 reference (matches the PyTorch module numerics)."""
    h = _act(x @ params["w1"] + params["b1"], activation)
    h = _act(h @ params["w2"] + params["b2"], activation)
    y = h @ params["w3"] + params["b3"]
    if last_act:
        y = _act(y, activation)
    return y + x if residual else y


def base_mlp_ref_bf16(x, params, *, activation="silu", residual=True, last_act=False):
    """Reference with the same bf16-operand / f32-accumulate matmuls as the kernel."""
    bf = jnp.bfloat16

    def lin(a, w, b):
        return jnp.dot(a.astype(bf), w.astype(bf),
                       preferred_element_type=jnp.float32) + b

    h = _act(lin(x, params["w1"], params["b1"]), activation)
    h = _act(lin(h, params["w2"], params["b2"]), activation)
    y = lin(h, params["w3"], params["b3"])
    if last_act:
        y = _act(y, activation)
    y = y + x if residual else y
    return y.astype(x.dtype)


def _check(x, prepared, raw, *, residual, last_act, tile_m=None):
    out = base_mlp_pallas(x, prepared, residual=residual, last_act=last_act,
                          tile_m=tile_m)
    out = jax.block_until_ready(out)
    ref_bf = base_mlp_ref_bf16(x, raw, residual=residual, last_act=last_act)
    ref_f32 = base_mlp_ref(x, raw, residual=residual, last_act=last_act)
    assert out.shape == ref_f32.shape
    # Tight check against a bf16-matmul-matched reference.
    assert jnp.allclose(out, ref_bf, atol=1e-3, rtol=1e-3), "mismatch vs bf16 reference"
    # Loose check against the exact-f32 PyTorch-equivalent reference.
    assert jnp.allclose(out, ref_f32, atol=5e-2, rtol=5e-2), "mismatch vs f32 reference"
    return out


if __name__ == "__main__":
    key = jax.random.PRNGKey(0)
    ks = jax.random.split(key, 6)

    # Case 1: tiny dims matching the module's usage; single-tile grid.
    N1, D1, H1 = 16, 32, 64
    x1 = jax.random.normal(ks[0], (N1, D1), jnp.float32)
    p1 = init_params(ks[1], D1, H1, D1)
    p1p = prepare_params(p1)  # hoisted pad + bf16 cast, done once per param set
    _check(x1, p1p, p1, residual=True, last_act=False)

    # Case 2: ragged N, non-128 feature dims; force a multi-step balanced-tile grid
    # (300 rows @ tile_m=128 -> 3 tiles of 104 rows, not 256 + a mostly-padded 44).
    N2, D2, H2 = 300, 48, 96
    x2 = jax.random.normal(ks[2], (N2, D2), jnp.float32)
    p2 = init_params(ks[3], D2, H2, D2)
    _check(x2, prepare_params(p2), p2, residual=True, last_act=False, tile_m=128)

    # Case 3: non-residual path with final activation (output_dim != input_dim).
    N3, D3, H3, O3 = 40, 24, 32, 16
    x3 = jax.random.normal(ks[4], (N3, D3), jnp.float32)
    p3 = init_params(ks[5], D3, H3, O3)
    _check(x3, prepare_params(p3), p3, residual=False, last_act=True)

    print("KERNEL_OK")
</pallas_src>

<mosaic_0001>
module attributes {stable_mosaic.version = 11 : i64} {
  func.func @_mlp_kernel(%arg0: i32, %arg1: memref<16x128xf32, #tpu.memory_space<vmem>>, %arg2: memref<128x128xbf16, #tpu.memory_space<vmem>>, %arg3: memref<1x128xf32, #tpu.memory_space<vmem>>, %arg4: memref<128x128xbf16, #tpu.memory_space<vmem>>, %arg5: memref<1x128xf32, #tpu.memory_space<vmem>>, %arg6: memref<128x128xbf16, #tpu.memory_space<vmem>>, %arg7: memref<1x128xf32, #tpu.memory_space<vmem>>, %arg8: memref<16x128xf32, #tpu.memory_space<vmem>>) attributes {dimension_semantics = [#tpu.dimension_semantics<parallel>], iteration_bounds = array<i64: 1>, scalar_prefetch = 0 : i64, scratch_operands = 0 : i64, tpu.core_type = #tpu.core_type<tc>, window_params = [{transform_indices = @transform_0, window_bounds = array<i64: 16, 128>}, {pipeline_mode = #tpu.pipeline_mode<synchronous>, transform_indices = @transform_1, window_bounds = array<i64: 128, 128>}, {pipeline_mode = #tpu.pipeline_mode<synchronous>, transform_indices = @transform_2, window_bounds = array<i64: 1, 128>}, {pipeline_mode = #tpu.pipeline_mode<synchronous>, transform_indices = @transform_3, window_bounds = array<i64: 128, 128>}, {pipeline_mode = #tpu.pipeline_mode<synchronous>, transform_indices = @transform_4, window_bounds = array<i64: 1, 128>}, {pipeline_mode = #tpu.pipeline_mode<synchronous>, transform_indices = @transform_5, window_bounds = array<i64: 128, 128>}, {pipeline_mode = #tpu.pipeline_mode<synchronous>, transform_indices = @transform_6, window_bounds = array<i64: 1, 128>}, {transform_indices = @transform_7, window_bounds = array<i64: 16, 128>}]} {
    %c0 = arith.constant 0 : index
    %c0_0 = arith.constant 0 : index
    %0 = vector.load %arg1[%c0, %c0_0] : memref<16x128xf32, #tpu.memory_space<vmem>>, vector<16x128xf32>
    %1 = arith.truncf %0 : vector<16x128xf32> to vector<16x128xbf16>
    %c0_1 = arith.constant 0 : index
    %c0_2 = arith.constant 0 : index
    %2 = vector.load %arg2[%c0_1, %c0_2] : memref<128x128xbf16, #tpu.memory_space<vmem>>, vector<128x128xbf16>
    %cst = arith.constant dense<0.000000e+00> : vector<16x128xf32>
    %3 = tpu.matmul %1, %2, %cst {dimension_numbers = #tpu.dot_dimension_numbers<[1], [0], [0], [1], [0, 0, 1, 1], [], []>} : vector<16x128xbf16>, vector<128x128xbf16>, vector<16x128xf32> -> vector<16x128xf32>
    %c0_3 = arith.constant 0 : index
    %c0_4 = arith.constant 0 : index
    %4 = vector.load %arg3[%c0_3, %c0_4] : memref<1x128xf32, #tpu.memory_space<vmem>>, vector<1x128xf32>
    %5 = vector.broadcast %4 : vector<1x128xf32> to vector<16x128xf32>
    %6 = arith.addf %3, %5 : vector<16x128xf32>
    %7 = arith.negf %6 : vector<16x128xf32>
    %8 = math.exp %7 : vector<16x128xf32>
    %cst_5 = arith.constant 1.000000e+00 : f32
    %9 = vector.broadcast %cst_5 : f32 to vector<16x128xf32>
    %10 = arith.addf %9, %8 : vector<16x128xf32>
    %11 = arith.divf %9, %10 : vector<16x128xf32>
    %12 = arith.mulf %6, %11 : vector<16x128xf32>
    %13 = arith.truncf %12 : vector<16x128xf32> to vector<16x128xbf16>
    %c0_6 = arith.constant 0 : index
    %c0_7 = arith.constant 0 : index
    %14 = vector.load %arg4[%c0_6, %c0_7] : memref<128x128xbf16, #tpu.memory_space<vmem>>, vector<128x128xbf16>
    %cst_8 = arith.constant dense<0.000000e+00> : vector<16x128xf32>
    %15 = tpu.matmul %13, %14, %cst_8 {dimension_numbers = #tpu.dot_dimension_numbers<[1], [0], [0], [1], [0, 0, 1, 1], [], []>} : vector<16x128xbf16>, vector<128x128xbf16>, vector<16x128xf32> -> vector<16x128xf32>
    %c0_9 = arith.constant 0 : index
    %c0_10 = arith.constant 0 : index
    %16 = vector.load %arg5[%c0_9, %c0_10] : memref<1x128xf32, #tpu.memory_space<vmem>>, vector<1x128xf32>
    %17 = vector.broadcast %16 : vector<1x128xf32> to vector<16x128xf32>
    %18 = arith.addf %15, %17 : vector<16x128xf32>
    %19 = arith.negf %18 : vector<16x128xf32>
    %20 = math.exp %19 : vector<16x128xf32>
    %cst_11 = arith.constant 1.000000e+00 : f32
    %21 = vector.broadcast %cst_11 : f32 to vector<16x128xf32>
    %22 = arith.addf %21, %20 : vector<16x128xf32>
    %23 = arith.divf %21, %22 : vector<16x128xf32>
    %24 = arith.mulf %18, %23 : vector<16x128xf32>
    %25 = arith.truncf %24 : vector<16x128xf32> to vector<16x128xbf16>
    %c0_12 = arith.constant 0 : index
    %c0_13 = arith.constant 0 : index
    %26 = vector.load %arg6[%c0_12, %c0_13] : memref<128x128xbf16, #tpu.memory_space<vmem>>, vector<128x128xbf16>
    %cst_14 = arith.constant dense<0.000000e+00> : vector<16x128xf32>
    %27 = tpu.matmul %25, %26, %cst_14 {dimension_numbers = #tpu.dot_dimension_numbers<[1], [0], [0], [1], [0, 0, 1, 1], [], []>} : vector<16x128xbf16>, vector<128x128xbf16>, vector<16x128xf32> -> vector<16x128xf32>
    %c0_15 = arith.constant 0 : index
    %c0_16 = arith.constant 0 : index
    %28 = vector.load %arg7[%c0_15, %c0_16] : memref<1x128xf32, #tpu.memory_space<vmem>>, vector<1x128xf32>
    %29 = vector.broadcast %28 : vector<1x128xf32> to vector<16x128xf32>
    %30 = arith.addf %27, %29 : vector<16x128xf32>
    %c0_17 = arith.constant 0 : index
    %c0_18 = arith.constant 0 : index
    %31 = vector.load %arg1[%c0_17, %c0_18] : memref<16x128xf32, #tpu.memory_space<vmem>>, vector<16x128xf32>
    %32 = arith.addf %30, %31 : vector<16x128xf32>
    %c0_19 = arith.constant 0 : index
    %c0_20 = arith.constant 0 : index
    %33 = vector.load %arg8[%c0_19, %c0_20] : memref<16x128xf32, #tpu.memory_space<vmem>>, vector<16x128xf32>
    tpu.vector_store %arg8[%c0_19, %c0_20], %32 {strides = array<i32>} : memref<16x128xf32, #tpu.memory_space<vmem>>, vector<16x128xf32>,
    return
  }
  func.func @transform_0(%arg0: i32) -> (i32, i32) {
    %c0_i32 = arith.constant 0 : i32
    %c0_i32_0 = arith.constant 0 : i32
    return %arg0, %c0_i32 : i32, i32
  }
  func.func @transform_1(%arg0: i32) -> (i32, i32) {
    %c0_i32 = arith.constant 0 : i32
    %c0_i32_0 = arith.constant 0 : i32
    %c0_i32_1 = arith.constant 0 : i32
    return %c0_i32, %c0_i32_0 : i32, i32
  }
  func.func @transform_2(%arg0: i32) -> (i32, i32) {
    %c0_i32 = arith.constant 0 : i32
    %c0_i32_0 = arith.constant 0 : i32
    %c0_i32_1 = arith.constant 0 : i32
    return %c0_i32, %c0_i32_0 : i32, i32
  }
  func.func @transform_3(%arg0: i32) -> (i32, i32) {
    %c0_i32 = arith.constant 0 : i32
    %c0_i32_0 = arith.constant 0 : i32
    %c0_i32_1 = arith.constant 0 : i32
    return %c0_i32, %c0_i32_0 : i32, i32
  }
  func.func @transform_4(%arg0: i32) -> (i32, i32) {
    %c0_i32 = arith.constant 0 : i32
    %c0_i32_0 = arith.constant 0 : i32
    %c0_i32_1 = arith.constant 0 : i32
    return %c0_i32, %c0_i32_0 : i32, i32
  }
  func.func @transform_5(%arg0: i32) -> (i32, i32) {
    %c0_i32 = arith.constant 0 : i32
    %c0_i32_0 = arith.constant 0 : i32
    %c0_i32_1 = arith.constant 0 : i32
    return %c0_i32, %c0_i32_0 : i32, i32
  }
  func.func @transform_6(%arg0: i32) -> (i32, i32) {
    %c0_i32 = arith.constant 0 : i32
    %c0_i32_0 = arith.constant 0 : i32
    %c0_i32_1 = arith.constant 0 : i32
    return %c0_i32, %c0_i32_0 : i32, i32
  }
  func.func @transform_7(%arg0: i32) -> (i32, i32) {
    %c0_i32 = arith.constant 0 : i32
    %c0_i32_0 = arith.constant 0 : i32
    return %arg0, %c0_i32 : i32, i32
  }
}

</mosaic_0001>

<bundles_post_ra>
// kernel: tpu_custom_call.1
= control target key start
LH: loop header
LB: loop body
LE: loop exit
PB: predicated region body
PF: predicated region fallthrough
CT: control target
= control target key end

     0   :  { %12 = vsyncpa [#allocation3], 0  ;;  %s813_s0 = inlined_call_operand.hbm [shape: f32[16,128], index: 0, kind: input, shape index: {}]   ;;  %s814_s1 = inlined_call_operand.hbm [shape: bf16[128,128], index: 1, kind: input, shape index: {}]   ;;  %s815_s2 = inlined_call_operand.vmem [shape: f32[1,128], index: 2, kind: input, shape index: {}]   ;;  %s816_s3 = inlined_call_operand.hbm [shape: bf16[128,128], index: 3, kind: input, shape index: {}]   ;;  %s817_s4 = inlined_call_operand.vmem [shape: f32[1,128], index: 4, kind: input, shape index: {}]   ;;  %s818_s5 = inlined_call_operand.hbm [shape: bf16[128,128], index: 5, kind: input, shape index: {}]   ;;  %s819_s6 = inlined_call_operand.vmem [shape: f32[1,128], index: 6, kind: input, shape index: {}]   ;;  %s820_s7 = inlined_call_operand.hbm [shape: f32[16,128], index: 7, kind: output, shape index: {}]  }
   0x1   :  { %13 = vsyncpa [#allocation6], 0 }
   0x2   :  { %14 = vsyncpa [#allocation9], 0  ;;  %s33_s26 = sshll.u32 %s814_s1, 4  ;;  %s34_s26 = int_to_ptr.hbm [resolvable:$true] %s33_s26 }
   0x3   :  { %15 = vsyncpa [#allocation4], 0  ;;  %s726_s27 = smov [#allocation5]   ;;  %s20_s8 = sshll.u32 %s813_s0, 4  ;;  %s21_s8 = int_to_ptr.hbm [resolvable:$true] %s20_s8 }
   0x4   :  { %s35_s28 = sshll.u32 %s726_s27, 4  ;;  %s727_s9 = smov 64   ;;  %s36_s28 = int_to_ptr.vmem [resolvable:$true] %s35_s28 }
   0x5   :  { %s728_s10 = smov 4   ;;  %s729_s11 = smov [#allocation2]  }
   0x6   :  { %41 = dma.hbm_to_vmem [thread:$0]  %s34_s26, 1024, %s36_s28, [#allocation6], %s727_s9, %s727_s9, %s728_s10  }
   0x7   :  { %s22_s12 = sshll.u32 %s729_s11, 4  ;;  %s730_s13 = smov 128   ;;  %s23_s12 = int_to_ptr.vmem [resolvable:$true] %s22_s12 }
   0x8   :  { %s731_s14 = smov 8   ;;  %s48_s16 = sshll.u32 %s816_s3, 4  ;;  %s49_s16 = int_to_ptr.hbm [resolvable:$true] %s48_s16 }
   0x9   :  { %28 = dma.hbm_to_vmem [thread:$0]  %s21_s8, 256, %s23_s12, [#allocation3], %s730_s13, %s730_s13, %s731_s14  }
   0xa   :  { %s732_s17 = smov [#allocation7]   ;;  %s63_s20 = sshll.u32 %s818_s5, 4  ;;  %s64_s20 = int_to_ptr.hbm [resolvable:$true] %s63_s20 }
   0xb   :  { %s50_s0 = sshll.u32 %s732_s17, 4  ;;  %s733_s21 = smov [#allocation8]   ;;  %s51_s0 = int_to_ptr.vmem [resolvable:$true] %s50_s0 }
   0xc   :  { %56 = dma.hbm_to_vmem [thread:$0]  %s49_s16, 1024, %s51_s0, [#allocation6], %s727_s9, %s727_s9, %s728_s10  }
   0xd   :  { %s65_s22 = sshll.u32 %s733_s21, 4  ;;  %s66_s22 = int_to_ptr.vmem [resolvable:$true] %s65_s22 }
   0xe   :  { %71 = dma.hbm_to_vmem [thread:$0]  %s64_s20, 1024, %s66_s22, [#allocation9], %s727_s9, %s727_s9, %s728_s10  }
   0xf   :  { %718 = dma.done.wait [#allocation3], 256  }
  0x10   :  { %719 = vsyncadd [#allocation3], 4294967040 }
  0x11   :  { %720 = dma.done.wait [#allocation6], 2048  }
  0x12   :  { %721 = vsyncadd [#allocation6], 4294965248 }
  0x13   :  { %722 = dma.done.wait [#allocation9], 1024  }
  0x14   :  { %723 = vsyncadd [#allocation9], 4294966272  ;;  %v553_v0 = vld [vmem:[#allocation5 + $0x38] sm:$0xff]  ;;  %v552_v1 = vld [vmem:[#allocation5 + $0x30] sm:$0xff]  ;;  %s734_s25 = smov [#allocation10]   ;;  %s431_s29 = sshll.u32 %s820_s7, 4  ;;  %s432_s29 = int_to_ptr.hbm [resolvable:$true] %s431_s29 }
  0x15   :  { %161 = vmatpush.bf16.msra.mxu0 %v553_v0  ;;  %v551_v2 = vld [vmem:[#allocation5 + $0x28] sm:$0xff]  ;;  %v550_v3 = vld [vmem:[#allocation5 + $0x20] sm:$0xff]  ;;  %v549_v4 = vld [vmem:[#allocation5 + $0x18] sm:$0xff]  ;;  %s429_s26 = sshll.u32 %s734_s25, 4  ;;  %s430_s26 = int_to_ptr.vmem [resolvable:$true] %s429_s26 }
  0x16   :  { %v548_v5 = vld [vmem:[#allocation5 + $0x10] sm:$0xff]  ;;  %v547_v6 = vld [vmem:[#allocation5 + $0x8] sm:$0xff]  ;;  %v546_v7 = vld [vmem:[#allocation5] sm:$0xff] }
  0x17   :  { %v790_v8 = vld [vmem:[#allocation2] sm:$0xff]  ;;  %v792_v9 = vld [vmem:[#allocation2 + $0x8] sm:$0xff]  ;;  %v559_v13 = vld [vmem:[#allocation7 + $0x28] sm:$0xff] }
  0x18   :  { %v92_v10 = vpack.c.bf16 %v792_v9, %v790_v8  ;;  %v561_v11 = vld [vmem:[#allocation7 + $0x38] sm:$0xff]  ;;  %v560_v12 = vld [vmem:[#allocation7 + $0x30] sm:$0xff]  ;;  %v558_v14 = vld [vmem:[#allocation7 + $0x20] sm:$0xff] }
  0x19   :  { %162 = vmatpush.bf16.msra.mxu0 %v552_v1  ;;  %284 = vmatpush.bf16.msra.mxu1 %v561_v11  ;;  %v557_v15 = vld [vmem:[#allocation7 + $0x18] sm:$0xff]  ;;  %v579_v16 = vld [vmem:[%s815_s2] ss:$0 sm:$0xff]  ;;  %v555_v20 = vld [vmem:[#allocation7 + $0x8] sm:$0xff] }
  0x1a   :  { %v556_v17 = vld [vmem:[#allocation7 + $0x10] sm:$0xff]  ;;  %v554_v22 = vld [vmem:[#allocation7] sm:$0xff]  ;;  %v569_v53 = vld [vmem:[#allocation8 + $0x38] sm:$0xff] }
  0x1b   :  { %407 = vmatpush.bf16.msra.mxu2 %v569_v53  ;;  %v568_v54 = vld [vmem:[#allocation8 + $0x30] sm:$0xff]  ;;  %v567_v55 = vld [vmem:[#allocation8 + $0x28] sm:$0xff]  ;;  %v566_v56 = vld [vmem:[#allocation8 + $0x20] sm:$0xff] }
  0x1c   :  { %v565_v57 = vld [vmem:[#allocation8 + $0x18] sm:$0xff]  ;;  %v580_v58 = vld [vmem:[%s817_s4] ss:$0 sm:$0xff]  ;;  %v563_v62 = vld [vmem:[#allocation8 + $0x8] sm:$0xff] }
  0x1d   :  { %163 = vmatpush.bf16.msra.mxu0 %v551_v2  ;;  %285 = vmatpush.bf16.msra.mxu1 %v560_v12  ;;  %v564_v59 = vld [vmem:[#allocation8 + $0x10] sm:$0xff]  ;;  %v562_v0 = vld [vmem:[#allocation8] sm:$0xff] }
  0x1f   :  { %408 = vmatpush.bf16.msra.mxu2 %v568_v54 }
  0x21   :  { %164 = vmatpush.bf16.msra.mxu0 %v550_v3  ;;  %286 = vmatpush.bf16.msra.mxu1 %v559_v13 }
  0x23   :  { %409 = vmatpush.bf16.msra.mxu2 %v567_v55 }
  0x25   :  { %165 = vmatpush.bf16.msra.mxu0 %v549_v4  ;;  %287 = vmatpush.bf16.msra.mxu1 %v558_v14 }
  0x27   :  { %410 = vmatpush.bf16.msra.mxu2 %v566_v56 }
  0x29   :  { %166 = vmatpush.bf16.msra.mxu0 %v548_v5  ;;  %288 = vmatpush.bf16.msra.mxu1 %v557_v15 }
  0x2b   :  { %411 = vmatpush.bf16.msra.mxu2 %v565_v57 }
  0x2d   :  { %167 = vmatpush.bf16.msra.mxu0 %v547_v6  ;;  %289 = vmatpush.bf16.msra.mxu1 %v556_v17 }
  0x2f   :  { %412 = vmatpush.bf16.msra.mxu2 %v564_v59 }
  0x31   :  { %168 = vmatpush.bf16.msra.mxu0 %v546_v7  ;;  %290 = vmatpush.bf16.msra.mxu1 %v555_v20 }
  0x33   :  { %413 = vmatpush.bf16.msra.mxu2 %v563_v62 }
  0x34   :  { %169 = vmatmul.bf16.vlgmr.msra.gmra.mxu0 %v92_v10 }
  0x35   :  { %291 = vmatpush.bf16.msra.mxu1 %v554_v22 }
  0x37   :  { %414 = vmatpush.bf16.msra.mxu2 %v562_v0 }
  0xb1   :  { %v170_v18 = vpop.f32.mrf.mxu0 }
  0xb2   :  { %v171_v19 = vadd.f32 %v579_v16, %v170_v18 }
  0xb4   :  { %v478_v21 = vmul.f32 -1.442695, %v171_v19 }
  0xb6   :  { %582 = vpow2.f32 %v478_v21 }
  0xb9   :  { %v172_v23 = vpop.f32.mrf.mxu0 }
  0xba   :  { %v173_v24 = vadd.f32 %v579_v16, %v172_v23 }
  0xbc   :  { %v583_v25 = vpop.eup %582  ;;  %v479_v26 = vmul.f32 -1.442695, %v173_v24 }
  0xbd   :  { %v181_v27 = vadd.f32 1.0, %v583_v25 }
  0xbe   :  { %584 = vpow2.f32 %v479_v26 }
  0xbf   :  { %586 = vrcp.f32 %v181_v27  ;;  %v194_v37 = vand.u32 2147483648, %v181_v27  ;;  %vm188_vm1 = vweird.f32 %v181_v27  ;;  %v192_v38 = vand.u32 2147483647, %v181_v27 }
  0xc1   :  { %v195_v44 = vor.u32 1.1754944e-38, %v194_v37  ;;  %vm193_vm4 = vcmp.eq.f32.partialorder %v192_v38, 8.507059e+37 }
  0xc4   :  { %v585_v28 = vpop.eup %584 }
  0xc5   :  { %v587_v29 = vpop.eup %586  ;;  %v182_v30 = vadd.f32 1.0, %v585_v28 }
  0xc6   :  { %v184_v31 = vmul.f32 %v587_v29, %v181_v27  ;;  %vm189_vm0 = vweird.f32 %v587_v29 }
  0xc7   :  { %588 = vrcp.f32 %v182_v30  ;;  %vm190_vm2 = vmor %vm188_vm1, %vm189_vm0  ;;  %v209_v40 = vand.u32 2147483648, %v182_v30  ;;  %v207_v43 = vand.u32 2147483647, %v182_v30  ;;  %vm203_vm5 = vweird.f32 %v182_v30 }
  0xc8   :  { %v185_v32 = vsub.f32 1.0, %v184_v31 }
  0xc9   :  { %v210_v47 = vor.u32 1.1754944e-38, %v209_v40  ;;  %vm208_vm7 = vcmp.eq.f32.partialorder %v207_v43, 8.507059e+37 }
  0xca   :  { %v186_v33 = vmul.f32 %v587_v29, %v185_v32 }
  0xcc   :  { %v187_v35 = vadd.f32 %v587_v29, %v186_v33  ;;  %v581_v33 = vld [vmem:[%s819_s6] ss:$0 sm:$0xff] }
  0xcd   :  { %v589_v34 = vpop.eup %588 }
  0xce   :  { %v199_v36 = vmul.f32 %v589_v34, %v182_v30  ;;  %v191_v41 = vsel %vm190_vm2, %v587_v29, %v187_v35  ;;  %vm204_vm3 = vweird.f32 %v589_v34 }
  0xcf   :  { %v196_v46 = vsel %vm193_vm4, %v195_v44, %v191_v41  ;;  %vm205_vm6 = vmor %vm203_vm5, %vm204_vm3 }
  0xd0   :  { %v200_v39 = vsub.f32 1.0, %v199_v36  ;;  %v213_v50 = vmul.f32 %v196_v46, %v171_v19 }
  0xd2   :  { %v201_v42 = vmul.f32 %v589_v34, %v200_v39 }
  0xd4   :  { %v202_v45 = vadd.f32 %v589_v34, %v201_v42 }
  0xd6   :  { %v206_v48 = vsel %vm205_vm6, %v589_v34, %v202_v45 }
  0xd7   :  { %v211_v49 = vsel %vm208_vm7, %v210_v47, %v206_v48 }
  0xd8   :  { %v214_v51 = vmul.f32 %v211_v49, %v173_v24 }
  0xda   :  { %v215_v52 = vpack.c.bf16 %v214_v51, %v213_v50 }
  0xdc   :  { %292 = vmatmul.bf16.vlgmr.msra.gmra.mxu1 %v215_v52 }
 0x159   :  { %v293_v60 = vpop.f32.mrf.mxu1 }
 0x15a   :  { %v294_v61 = vadd.f32 %v580_v58, %v293_v60 }
 0x15c   :  { %v512_v63 = vmul.f32 -1.442695, %v294_v61 }
 0x15e   :  { %590 = vpow2.f32 %v512_v63 }
 0x161   :  { %v295_v1 = vpop.f32.mrf.mxu1 }
 0x162   :  { %v296_v2 = vadd.f32 %v580_v58, %v295_v1 }
 0x164   :  { %v591_v3 = vpop.eup %590  ;;  %v513_v4 = vmul.f32 -1.442695, %v296_v2 }
 0x165   :  { %v304_v5 = vadd.f32 1.0, %v591_v3 }
 0x166   :  { %592 = vpow2.f32 %v513_v4 }
 0x167   :  { %594 = vrcp.f32 %v304_v5  ;;  %v317_v17 = vand.u32 2147483648, %v304_v5  ;;  %vm311_vm9 = vweird.f32 %v304_v5  ;;  %v315_v18 = vand.u32 2147483647, %v304_v5 }
 0x169   :  { %v318_v24 = vor.u32 1.1754944e-38, %v317_v17  ;;  %vm316_vm12 = vcmp.eq.f32.partialorder %v315_v18, 8.507059e+37 }
 0x16c   :  { %v593_v6 = vpop.eup %592 }
 0x16d   :  { %v595_v7 = vpop.eup %594  ;;  %v305_v10 = vadd.f32 1.0, %v593_v6 }
 0x16e   :  { %v307_v11 = vmul.f32 %v595_v7, %v304_v5  ;;  %vm312_vm8 = vweird.f32 %v595_v7 }
 0x16f   :  { %596 = vrcp.f32 %v305_v10  ;;  %vm313_vm10 = vmor %vm311_vm9, %vm312_vm8  ;;  %v332_v20 = vand.u32 2147483648, %v305_v10  ;;  %v330_v23 = vand.u32 2147483647, %v305_v10  ;;  %vm326_vm13 = vweird.f32 %v305_v10 }
 0x170   :  { %v308_v12 = vsub.f32 1.0, %v307_v11 }
 0x171   :  { %v333_v27 = vor.u32 1.1754944e-38, %v332_v20  ;;  %vm331_vm15 = vcmp.eq.f32.partialorder %v330_v23, 8.507059e+37 }
 0x172   :  { %v309_v13 = vmul.f32 %v595_v7, %v308_v12 }
 0x174   :  { %v310_v15 = vadd.f32 %v595_v7, %v309_v13 }
 0x175   :  { %v597_v14 = vpop.eup %596 }
 0x176   :  { %v322_v16 = vmul.f32 %v597_v14, %v305_v10  ;;  %v314_v21 = vsel %vm313_vm10, %v595_v7, %v310_v15  ;;  %vm327_vm11 = vweird.f32 %v597_v14 }
 0x177   :  { %v319_v26 = vsel %vm316_vm12, %v318_v24, %v314_v21  ;;  %vm328_vm14 = vmor %vm326_vm13, %vm327_vm11 }
 0x178   :  { %v323_v19 = vsub.f32 1.0, %v322_v16  ;;  %v336_v30 = vmul.f32 %v319_v26, %v294_v61 }
 0x17a   :  { %v324_v22 = vmul.f32 %v597_v14, %v323_v19 }
 0x17c   :  { %v325_v25 = vadd.f32 %v597_v14, %v324_v22 }
 0x17e   :  { %v329_v28 = vsel %vm328_vm14, %v597_v14, %v325_v25 }
 0x17f   :  { %v334_v29 = vsel %vm331_vm15, %v333_v27, %v329_v28 }
 0x180   :  { %v337_v31 = vmul.f32 %v334_v29, %v296_v2 }
 0x182   :  { %v338_v32 = vpack.c.bf16 %v337_v31, %v336_v30 }
 0x184   :  { %415 = vmatmul.bf16.vlgmr.msra.gmra.mxu2 %v338_v32 }
 0x207   :  { %v416_v34 = vpop.f32.mrf.mxu2 }
 0x208   :  { %v417_v35 = vadd.f32 %v581_v33, %v416_v34 }
 0x20a   :  { %v421_v36 = vadd.f32 %v417_v35, %v790_v8 }
 0x20c   :  { %423 = vst [vmem:[#allocation10] sm:$0xff] %v421_v36 }
 0x20f   :  { %v418_v37 = vpop.f32.mrf.mxu2 }
 0x210   :  { %v419_v38 = vadd.f32 %v581_v33, %v418_v37 }
 0x212   :  { %v422_v39 = vadd.f32 %v419_v38, %v792_v9 }
 0x214   :  { %424 = vst [vmem:[#allocation10 + $0x8] sm:$0xff] %v422_v39 }
 0x215   :  { %437 = dma.vmem_to_hbm [thread:$0]  %s430_s26, 256, %s432_s29, [#allocation4], %s730_s13, %s730_s13, %s731_s14  }
 0x216   :  { %724 = dma.done.wait [#allocation4], 256  }
 0x217   :  { %725 = vsyncadd [#allocation4], 4294967040 }
 0x218   :  { %442 = vsyncpa [#allocation3], 1 }
 0x219   :  { %443 = vsyncpa [#allocation6], 1 }
 0x21a   :  { %444 = vsyncpa [#allocation9], 1 }
 0x21b   :  { %445 = vsyncpa [#allocation4], 1 }

</bundles_post_ra>
